<compile_context>
chip_gen: v7x
topology: tpu7x:2x2x1
jax: 0.10.0
libtpu: 0.0.40
codegen_flags: <defaults>
</compile_context>

<pallas_src>
import numpy as np
import jax
import jax.numpy as jnp
from jax.experimental import pallas as pl
from jax.experimental.pallas import tpu as pltpu


# ---------------------------- Pallas kernel ----------------------------

def _scale_kernel(x_ref, o_ref):
    # Hot path of image_deal: cast (no-op for f32) + multiply by 1/255 on the
    # VPU.  Tiles are flat (block_rows, L) views with L a multiple of 128, so
    # loads/stores are full-lane and unmasked.
    o_ref[...] = x_ref[...].astype(jnp.float32) * jnp.float32(1.0 / 255.0)


# ---------------------------- helpers ----------------------------

def _round_up(a, b):
    return ((a + b - 1) // b) * b


_LANE_CANDIDATES = (1024, 896, 768, 640, 512, 384, 256, 128)


def _pick_lane_width(n):
    for cand in _LANE_CANDIDATES:
        if n % cand == 0:
            return cand
    return 0


def _scale_flat(x_flat):
    """x_flat: (n,) real dtype -> (n,) float32 == x_flat / 255 (Pallas)."""
    n = x_flat.shape[0]
    lane = _pick_lane_width(n)
    if lane == 0:
        # TODO(synk): element counts with no multiple-of-128 divisor take the
        # single whole-array-block path (only sensible for small inputs).
        return pl.pallas_call(
            _scale_kernel,
            out_shape=jax.ShapeDtypeStruct((n,), jnp.float32),
        )(x_flat)

    rows = n // lane
    itemsize = np.dtype(x_flat.dtype).itemsize
    # Minimum sublane multiple per dtype width (f32: 8, bf16: 16, u8: 32).
    sub = {4: 8, 2: 16, 1: 32}.get(itemsize, 8)

    if rows <= sub:
        block_rows = rows  # equal to the full dim -> always legal
    else:
        # ~1 MiB of f32 output per block: tile sweeps show >=512 KiB blocks
        # already sit at the HBM roofline, and double-buffered in+out stays
        # well under the default scoped-VMEM limits on v5e/v6e/v7x.
        cap = max(sub, ((1 << 20) // (lane * 4)) // sub * sub)
        block_rows = min(cap, _round_up(rows, sub))

    x2 = x_flat.reshape(rows, lane)
    out = pl.pallas_call(
        _scale_kernel,
        out_shape=jax.ShapeDtypeStruct((rows, lane), jnp.float32),
        grid=(pl.cdiv(rows, block_rows),),
        in_specs=[pl.BlockSpec((block_rows, lane), lambda r: (r, 0))],
        out_specs=pl.BlockSpec((block_rows, lane), lambda r: (r, 0)),
        compiler_params=pltpu.CompilerParams(
            dimension_semantics=("parallel",)),
    )(x2)
    return out.reshape(n)


# ---------------------------- forward wrapper ----------------------------

def image_deal_forward(x):
    """x: [B, H, W, C] pixels in [0, 255] -> [B, C, H, W] float32 in [0, 1]."""
    B, H, W, C = x.shape
    # Reshapes to/from the flat view are free (same contiguous layout).
    scaled = _scale_flat(x.reshape(B * H * W * C)).reshape(B, H, W, C)
    # TODO(synk): NHWC->NCHW permute done by one XLA transpose (see header);
    # fold into the downstream consumer's BlockSpec when composed.
    return jnp.transpose(scaled, (0, 3, 1, 2))


# ---------------------------- pure-JAX reference ----------------------------

def image_deal_reference(x):
    return jnp.transpose(x.astype(jnp.float32) / 255.0, (0, 3, 1, 2))


if __name__ == "__main__":
    key = jax.random.PRNGKey(0)
    B, H, W, C = 2, 32, 32, 3
    x = jax.random.uniform(key, (B, H, W, C), dtype=jnp.float32,
                           minval=0.0, maxval=255.0)

    fwd = jax.jit(image_deal_forward)
    out = jax.block_until_ready(fwd(x))

    ref = image_deal_reference(x)
    assert out.shape == ref.shape and out.dtype == ref.dtype, (out.shape, ref.shape)
    np.testing.assert_allclose(np.asarray(out), np.asarray(ref),
                               rtol=1e-5, atol=1e-6)

    print("KERNEL_OK")
</pallas_src>

<mosaic_0001>
module attributes {stable_mosaic.version = 11 : i64} {
  func.func @_scale_kernel(%arg0: i32, %arg1: memref<6x1024xf32, #tpu.memory_space<vmem>>, %arg2: memref<6x1024xf32, #tpu.memory_space<vmem>>) attributes {dimension_semantics = [#tpu.dimension_semantics<parallel>], iteration_bounds = array<i64: 1>, scalar_prefetch = 0 : i64, scratch_operands = 0 : i64, tpu.core_type = #tpu.core_type<tc>, window_params = [{transform_indices = @transform_0, window_bounds = array<i64: 6, 1024>}, {transform_indices = @transform_1, window_bounds = array<i64: 6, 1024>}]} {
    %c0 = arith.constant 0 : index
    %c0_0 = arith.constant 0 : index
    %0 = vector.load %arg1[%c0, %c0_0] : memref<6x1024xf32, #tpu.memory_space<vmem>>, vector<6x1024xf32>
    %cst = arith.constant 0.00392156886 : f32
    %1 = vector.broadcast %cst : f32 to vector<6x1024xf32>
    %2 = arith.mulf %0, %1 : vector<6x1024xf32>
    %c0_1 = arith.constant 0 : index
    %c0_2 = arith.constant 0 : index
    %3 = vector.load %arg2[%c0_1, %c0_2] : memref<6x1024xf32, #tpu.memory_space<vmem>>, vector<6x1024xf32>
    tpu.vector_store %arg2[%c0_1, %c0_2], %2 {strides = array<i32>} : memref<6x1024xf32, #tpu.memory_space<vmem>>, vector<6x1024xf32>,
    return
  }
  func.func @transform_0(%arg0: i32) -> (i32, i32) {
    %c0_i32 = arith.constant 0 : i32
    %c0_i32_0 = arith.constant 0 : i32
    return %arg0, %c0_i32 : i32, i32
  }
  func.func @transform_1(%arg0: i32) -> (i32, i32) {
    %c0_i32 = arith.constant 0 : i32
    %c0_i32_0 = arith.constant 0 : i32
    return %arg0, %c0_i32 : i32, i32
  }
}

</mosaic_0001>

<bundles_post_ra>
// kernel: image_deal_forward.1
= control target key start
LH: loop header
LB: loop body
LE: loop exit
PB: predicated region body
PF: predicated region fallthrough
CT: control target
= control target key end

     0   :  { %s94_s0 = inlined_call_operand.vmem [shape: f32[6,1024], index: 0, kind: input, shape index: {}]   ;;  %s95_s1 = inlined_call_operand.vmem [shape: f32[6,1024], index: 1, kind: output, shape index: {}]  }
   0x1   :  { %v8_v0 = vld [vmem:[%s94_s0] sm:$0x3f]  ;;  %v9_v1 = vld [vmem:[%s94_s0 + $0x8] sm:$0x3f]  ;;  %v10_v2 = vld [vmem:[%s94_s0 + $0x10] sm:$0x3f] }
   0x2   :  { %v16_v3 = vmul.f32 0.003921569, %v8_v0  ;;  %v17_v4 = vmul.f32 0.003921569, %v9_v1  ;;  %v18_v5 = vmul.f32 0.003921569, %v10_v2 }
   0x3   :  { %v11_v6 = vld [vmem:[%s94_s0 + $0x18] sm:$0x3f]  ;;  %v12_v7 = vld [vmem:[%s94_s0 + $0x20] sm:$0x3f]  ;;  %v13_v8 = vld [vmem:[%s94_s0 + $0x28] sm:$0x3f] }
   0x4   :  { %24 = vst [vmem:[%s95_s1] sm:$0x3f] %v16_v3  ;;  %25 = vst [vmem:[%s95_s1 + $0x8] sm:$0x3f] %v17_v4  ;;  %v19_v9 = vmul.f32 0.003921569, %v11_v6 }
   0x5   :  { %26 = vst [vmem:[%s95_s1 + $0x10] sm:$0x3f] %v18_v5  ;;  %v20_v10 = vmul.f32 0.003921569, %v12_v7  ;;  %v21_v11 = vmul.f32 0.003921569, %v13_v8 }
   0x6   :  { %v14_v12 = vld [vmem:[%s94_s0 + $0x30] sm:$0x3f]  ;;  %v15_v13 = vld [vmem:[%s94_s0 + $0x38] sm:$0x3f]  ;;  %27 = vst [vmem:[%s95_s1 + $0x18] sm:$0x3f] %v19_v9 }
   0x7   :  { %28 = vst [vmem:[%s95_s1 + $0x20] sm:$0x3f] %v20_v10  ;;  %29 = vst [vmem:[%s95_s1 + $0x28] sm:$0x3f] %v21_v11  ;;  %v22_v14 = vmul.f32 0.003921569, %v14_v12 }
   0x8   :  { %v23_v15 = vmul.f32 0.003921569, %v15_v13 }
   0x9   :  { %30 = vst [vmem:[%s95_s1 + $0x30] sm:$0x3f] %v22_v14 }
   0xa   :  { %31 = vst [vmem:[%s95_s1 + $0x38] sm:$0x3f] %v23_v15 }

</bundles_post_ra>
